<compile_context>
chip_gen: v6e
topology: v6e:2x2x1
jax: 0.10.0
libtpu: 0.0.40
codegen_flags: <defaults>
</compile_context>

<pallas_src>
import functools

import jax
import jax.numpy as jnp
from jax.experimental import pallas as pl
from jax.experimental.pallas import tpu as pltpu

N_SLICES = 8
MAX_TILE_N = 65536   # lanes per grid step; ~176*TN bytes of double-buffered VMEM
VMEM_LIMIT = 32 * 1024 * 1024


def _pick_tile(n, max_tn=MAX_TILE_N):
    """Largest tile TN (multiple of 128 that divides N) not exceeding max_tn.
    Falls back to the full width (always a legal block) if none exists.
    TODO(synk): N not a multiple of 128 currently falls back to a single
    full-width block; padding is unsafe here because pad values would interleave
    differently after the per-slice sort."""
    if n <= max_tn:
        return n
    tn = (max_tn // 128) * 128
    while tn >= 128:
        if n % tn == 0:
            return tn
        tn -= 128
    return n


# ---------------- Pallas kernels ----------------

def _proj_kernel(p0_ref, p1_ref, p2_ref, xt_ref, yt_ref, o_ref):
    # p*_ref: (S, 1) projection-vector components; xt/yt: (3, TN); o: (2S, TN)
    s = p0_ref.shape[0]
    p0, p1, p2 = p0_ref[...], p1_ref[...], p2_ref[...]
    xp = p0 * xt_ref[0:1, :] + p1 * xt_ref[1:2, :] + p2 * xt_ref[2:3, :]
    yp = p0 * yt_ref[0:1, :] + p1 * yt_ref[1:2, :] + p2 * yt_ref[2:3, :]
    o_ref[:s, :] = xp   # rows [:S]  : x projections (sublane-aligned slab)
    o_ref[s:, :] = yp   # rows [S:2S]: y projections


def _loss_kernel(s_ref, o_ref, *, n_slices, inv_n):
    # s_ref: (2S, TN) sorted projections tile; o_ref: resident (1, 1) accumulator
    i = pl.program_id(0)

    @pl.when(i == 0)
    def _init():
        o_ref[...] = jnp.zeros_like(o_ref)

    blk = s_ref[...]
    d = blk[:n_slices, :] - blk[n_slices:, :]
    o_ref[...] += jnp.sum(d * d, keepdims=True)

    @pl.when(i == pl.num_programs(0) - 1)
    def _finalize():
        # sum over slices of mean over points == (1/N) * sum over everything
        o_ref[...] = o_ref[...] * inv_n


# ---------------- wrappers ----------------

def _project(p0, p1, p2, xt, yt, tn):
    s = p0.shape[0]
    n = xt.shape[1]
    return pl.pallas_call(
        _proj_kernel,
        out_shape=jax.ShapeDtypeStruct((2 * s, n), jnp.float32),
        grid=(n // tn,),
        in_specs=[
            pl.BlockSpec((s, 1), lambda i: (0, 0)),    # resident tiny blocks
            pl.BlockSpec((s, 1), lambda i: (0, 0)),
            pl.BlockSpec((s, 1), lambda i: (0, 0)),
            pl.BlockSpec((3, tn), lambda i: (0, i)),
            pl.BlockSpec((3, tn), lambda i: (0, i)),
        ],
        out_specs=pl.BlockSpec((2 * s, tn), lambda i: (0, i)),
        compiler_params=pltpu.CompilerParams(
            dimension_semantics=("parallel",),         # point tiles independent
            vmem_limit_bytes=VMEM_LIMIT),
    )(p0, p1, p2, xt, yt)


def _sw_reduce(sorted_proj, n_slices, tn):
    n = sorted_proj.shape[1]
    out = pl.pallas_call(
        functools.partial(_loss_kernel, n_slices=n_slices, inv_n=1.0 / n),
        out_shape=jax.ShapeDtypeStruct((1, 1), jnp.float32),
        grid=(n // tn,),
        in_specs=[pl.BlockSpec((2 * n_slices, tn), lambda i: (0, i))],
        out_specs=pl.BlockSpec((1, 1), lambda i: (0, 0)),   # resident accumulator
        compiler_params=pltpu.CompilerParams(
            dimension_semantics=("arbitrary",),              # reduction over tiles
            vmem_limit_bytes=VMEM_LIMIT),
    )(sorted_proj)
    return out[0, 0]


def _make_proj_vec(key, n_slices):
    """Random slice directions, identical construction to the torch module."""
    k1, k2 = jax.random.split(key)
    a1 = jax.random.uniform(k1, (n_slices,), dtype=jnp.float32) * 2.0 * jnp.pi
    a2 = jax.random.uniform(k2, (n_slices,), dtype=jnp.float32) * 2.0 * jnp.pi
    return jnp.stack(
        [jnp.cos(a1), jnp.sin(a1) * jnp.cos(a2), jnp.sin(a1) * jnp.sin(a2)],
        axis=1,
    )  # (S, 3) — the torch proj_vec with the trailing singleton dim dropped


def sliced_ws_loss_3d(x, y, key, n_slices=N_SLICES, max_tile=MAX_TILE_N):
    """x, y: (1, N, 3) float32. Returns the scalar SW loss."""
    proj_vec = _make_proj_vec(key, n_slices)

    x2 = jnp.squeeze(x, 0).astype(jnp.float32)  # (N, 3)
    y2 = jnp.squeeze(y, 0).astype(jnp.float32)
    n = x2.shape[0]
    tn = _pick_tile(n, max_tile)

    # (N, 3) -> (3, N): point axis on lanes. No 3->8 zero padding (was 2.67x
    # extra HBM read on the streaming-bound projection).
    # TODO(synk): this transpose is still one extra XLA pass per cloud; folding
    # the re-layout into the kernel prologue would remove it.
    xt = x2.T
    yt = y2.T

    # projection-vector components as (S, 1) columns (tiny; avoids any in-kernel
    # lane slicing of the 3-wide coordinate axis)
    p0 = proj_vec[:, 0:1]
    p1 = proj_vec[:, 1:2]
    p2 = proj_vec[:, 2:3]

    proj = _project(p0, p1, p2, xt, yt, tn)  # (2S, N): x-proj rows then y-proj rows

    # TODO(synk): lax.sort has no Mosaic/Pallas TPU lowering; the per-slice sort
    # stays in XLA between the two Pallas kernels (one fused sort call covering
    # both clouds' projections).
    proj_sorted = jnp.sort(proj, axis=-1)

    return _sw_reduce(proj_sorted, n_slices, tn)


def _reference(x, y, proj_vec):
    x2 = jnp.squeeze(x, 0)
    y2 = jnp.squeeze(y, 0)
    xp = jnp.sort(proj_vec @ x2.T, axis=-1)  # (S, N)
    yp = jnp.sort(proj_vec @ y2.T, axis=-1)
    return jnp.sum(jnp.mean((xp - yp) ** 2, axis=1))


if __name__ == "__main__":
    key = jax.random.PRNGKey(0)
    kx, ky, kproj = jax.random.split(key, 3)

    N = 1024  # number of 3-D points
    x = jax.random.normal(kx, (1, N, 3), dtype=jnp.float32)
    y = jax.random.normal(ky, (1, N, 3), dtype=jnp.float32)

    fn = jax.jit(sliced_ws_loss_3d, static_argnames=("n_slices", "max_tile"))
    ref = _reference(x, y, _make_proj_vec(kproj, N_SLICES))

    # Exercise both a multi-step grid (tile 256 -> 4 steps) and a single-step
    # grid (full-width tile); both must match the pure-JAX reference.
    for max_tile in (256, MAX_TILE_N):
        loss = jax.block_until_ready(
            fn(x, y, kproj, n_slices=N_SLICES, max_tile=max_tile))
        assert jnp.allclose(loss, ref, rtol=1e-5, atol=1e-5), (max_tile, loss, ref)

    print("KERNEL_OK")
</pallas_src>

<mosaic_0001>
module attributes {stable_mosaic.version = 11 : i64} {
  func.func @_proj_kernel(%arg0: i32, %arg1: memref<8x1xf32, #tpu.memory_space<vmem>>, %arg2: memref<8x1xf32, #tpu.memory_space<vmem>>, %arg3: memref<8x1xf32, #tpu.memory_space<vmem>>, %arg4: memref<3x256xf32, #tpu.memory_space<vmem>>, %arg5: memref<3x256xf32, #tpu.memory_space<vmem>>, %arg6: memref<16x256xf32, #tpu.memory_space<vmem>>) attributes {dimension_semantics = [#tpu.dimension_semantics<parallel>], iteration_bounds = array<i64: 4>, scalar_prefetch = 0 : i64, scratch_operands = 0 : i64, tpu.core_type = #tpu.core_type<tc>, window_params = [{pipeline_mode = #tpu.pipeline_mode<synchronous>, transform_indices = @transform_0, window_bounds = array<i64: 8, 1>}, {pipeline_mode = #tpu.pipeline_mode<synchronous>, transform_indices = @transform_1, window_bounds = array<i64: 8, 1>}, {pipeline_mode = #tpu.pipeline_mode<synchronous>, transform_indices = @transform_2, window_bounds = array<i64: 8, 1>}, {transform_indices = @transform_3, window_bounds = array<i64: 3, 256>}, {transform_indices = @transform_4, window_bounds = array<i64: 3, 256>}, {transform_indices = @transform_5, window_bounds = array<i64: 16, 256>}]} {
    %c0 = arith.constant 0 : index
    %c0_0 = arith.constant 0 : index
    %0 = vector.load %arg1[%c0, %c0_0] : memref<8x1xf32, #tpu.memory_space<vmem>>, vector<8x1xf32>
    %c0_1 = arith.constant 0 : index
    %c0_2 = arith.constant 0 : index
    %1 = vector.load %arg2[%c0_1, %c0_2] : memref<8x1xf32, #tpu.memory_space<vmem>>, vector<8x1xf32>
    %c0_3 = arith.constant 0 : index
    %c0_4 = arith.constant 0 : index
    %2 = vector.load %arg3[%c0_3, %c0_4] : memref<8x1xf32, #tpu.memory_space<vmem>>, vector<8x1xf32>
    %c0_5 = arith.constant 0 : index
    %c0_6 = arith.constant 0 : index
    %3 = vector.load %arg4[%c0_5, %c0_6] : memref<3x256xf32, #tpu.memory_space<vmem>>, vector<1x256xf32>
    %4 = vector.broadcast %0 : vector<8x1xf32> to vector<8x256xf32>
    %5 = vector.broadcast %3 : vector<1x256xf32> to vector<8x256xf32>
    %6 = arith.mulf %4, %5 : vector<8x256xf32>
    %c1 = arith.constant 1 : index
    %c0_7 = arith.constant 0 : index
    %7 = vector.load %arg4[%c1, %c0_7] : memref<3x256xf32, #tpu.memory_space<vmem>>, vector<1x256xf32>
    %8 = vector.broadcast %1 : vector<8x1xf32> to vector<8x256xf32>
    %9 = vector.broadcast %7 : vector<1x256xf32> to vector<8x256xf32>
    %10 = arith.mulf %8, %9 : vector<8x256xf32>
    %11 = arith.addf %6, %10 : vector<8x256xf32>
    %c2 = arith.constant 2 : index
    %c0_8 = arith.constant 0 : index
    %12 = vector.load %arg4[%c2, %c0_8] : memref<3x256xf32, #tpu.memory_space<vmem>>, vector<1x256xf32>
    %13 = vector.broadcast %2 : vector<8x1xf32> to vector<8x256xf32>
    %14 = vector.broadcast %12 : vector<1x256xf32> to vector<8x256xf32>
    %15 = arith.mulf %13, %14 : vector<8x256xf32>
    %16 = arith.addf %11, %15 : vector<8x256xf32>
    %c0_9 = arith.constant 0 : index
    %c0_10 = arith.constant 0 : index
    %17 = vector.load %arg5[%c0_9, %c0_10] : memref<3x256xf32, #tpu.memory_space<vmem>>, vector<1x256xf32>
    %18 = vector.broadcast %0 : vector<8x1xf32> to vector<8x256xf32>
    %19 = vector.broadcast %17 : vector<1x256xf32> to vector<8x256xf32>
    %20 = arith.mulf %18, %19 : vector<8x256xf32>
    %c1_11 = arith.constant 1 : index
    %c0_12 = arith.constant 0 : index
    %21 = vector.load %arg5[%c1_11, %c0_12] : memref<3x256xf32, #tpu.memory_space<vmem>>, vector<1x256xf32>
    %22 = vector.broadcast %1 : vector<8x1xf32> to vector<8x256xf32>
    %23 = vector.broadcast %21 : vector<1x256xf32> to vector<8x256xf32>
    %24 = arith.mulf %22, %23 : vector<8x256xf32>
    %25 = arith.addf %20, %24 : vector<8x256xf32>
    %c2_13 = arith.constant 2 : index
    %c0_14 = arith.constant 0 : index
    %26 = vector.load %arg5[%c2_13, %c0_14] : memref<3x256xf32, #tpu.memory_space<vmem>>, vector<1x256xf32>
    %27 = vector.broadcast %2 : vector<8x1xf32> to vector<8x256xf32>
    %28 = vector.broadcast %26 : vector<1x256xf32> to vector<8x256xf32>
    %29 = arith.mulf %27, %28 : vector<8x256xf32>
    %30 = arith.addf %25, %29 : vector<8x256xf32>
    %c0_15 = arith.constant 0 : index
    %c0_16 = arith.constant 0 : index
    %31 = vector.load %arg6[%c0_15, %c0_16] : memref<16x256xf32, #tpu.memory_space<vmem>>, vector<8x256xf32>
    tpu.vector_store %arg6[%c0_15, %c0_16], %16 {strides = array<i32>} : memref<16x256xf32, #tpu.memory_space<vmem>>, vector<8x256xf32>,
    %c8 = arith.constant 8 : index
    %c0_17 = arith.constant 0 : index
    %32 = vector.load %arg6[%c8, %c0_17] : memref<16x256xf32, #tpu.memory_space<vmem>>, vector<8x256xf32>
    tpu.vector_store %arg6[%c8, %c0_17], %30 {strides = array<i32>} : memref<16x256xf32, #tpu.memory_space<vmem>>, vector<8x256xf32>,
    return
  }
  func.func @transform_0(%arg0: i32) -> (i32, i32) {
    %c0_i32 = arith.constant 0 : i32
    %c0_i32_0 = arith.constant 0 : i32
    %c0_i32_1 = arith.constant 0 : i32
    return %c0_i32, %c0_i32_0 : i32, i32
  }
  func.func @transform_1(%arg0: i32) -> (i32, i32) {
    %c0_i32 = arith.constant 0 : i32
    %c0_i32_0 = arith.constant 0 : i32
    %c0_i32_1 = arith.constant 0 : i32
    return %c0_i32, %c0_i32_0 : i32, i32
  }
  func.func @transform_2(%arg0: i32) -> (i32, i32) {
    %c0_i32 = arith.constant 0 : i32
    %c0_i32_0 = arith.constant 0 : i32
    %c0_i32_1 = arith.constant 0 : i32
    return %c0_i32, %c0_i32_0 : i32, i32
  }
  func.func @transform_3(%arg0: i32) -> (i32, i32) {
    %c0_i32 = arith.constant 0 : i32
    %c0_i32_0 = arith.constant 0 : i32
    return %c0_i32, %arg0 : i32, i32
  }
  func.func @transform_4(%arg0: i32) -> (i32, i32) {
    %c0_i32 = arith.constant 0 : i32
    %c0_i32_0 = arith.constant 0 : i32
    return %c0_i32, %arg0 : i32, i32
  }
  func.func @transform_5(%arg0: i32) -> (i32, i32) {
    %c0_i32 = arith.constant 0 : i32
    %c0_i32_0 = arith.constant 0 : i32
    return %c0_i32, %arg0 : i32, i32
  }
}

module attributes {stable_mosaic.version = 11 : i64} {
  func.func @_loss_kernel(%arg0: i32, %arg1: memref<16x256xf32, #tpu.memory_space<vmem>>, %arg2: memref<1x1xf32, #tpu.memory_space<vmem>>) attributes {dimension_semantics = [#tpu.dimension_semantics<arbitrary>], iteration_bounds = array<i64: 4>, scalar_prefetch = 0 : i64, scratch_operands = 0 : i64, tpu.core_type = #tpu.core_type<tc>, window_params = [{transform_indices = @transform_0, window_bounds = array<i64: 16, 256>}, {pipeline_mode = #tpu.pipeline_mode<synchronous>, transform_indices = @transform_1, window_bounds = array<i64: 1, 1>}]} {
    %c0_i32 = arith.constant 0 : i32
    %0 = arith.cmpi eq, %arg0, %c0_i32 : i32
    %1 = arith.extui %0 : i1 to i32
    %c0_i32_0 = arith.constant 0 : i32
    %2 = arith.cmpi ne, %1, %c0_i32_0 : i32
    scf.if %2 {
      %cst_7 = arith.constant 0.000000e+00 : f32
      %19 = vector.broadcast %cst_7 : f32 to vector<1x1xf32>
      %c0_8 = arith.constant 0 : index
      %c0_9 = arith.constant 0 : index
      %20 = vector.load %arg2[%c0_8, %c0_9] : memref<1x1xf32, #tpu.memory_space<vmem>>, vector<1x1xf32>
      tpu.vector_store %arg2[%c0_8, %c0_9], %19 {strides = array<i32>} : memref<1x1xf32, #tpu.memory_space<vmem>>, vector<1x1xf32>,
    } else {
    }
    %c0 = arith.constant 0 : index
    %c0_1 = arith.constant 0 : index
    %3 = vector.load %arg1[%c0, %c0_1] : memref<16x256xf32, #tpu.memory_space<vmem>>, vector<16x256xf32>
    %4 = vector.extract_strided_slice %3 {offsets = [0, 0], sizes = [8, 256], strides = [1, 1]} : vector<16x256xf32> to vector<8x256xf32>
    %5 = vector.extract_strided_slice %3 {offsets = [8, 0], sizes = [8, 256], strides = [1, 1]} : vector<16x256xf32> to vector<8x256xf32>
    %6 = arith.subf %4, %5 : vector<8x256xf32>
    %c0_2 = arith.constant 0 : index
    %c0_3 = arith.constant 0 : index
    %7 = vector.load %arg2[%c0_2, %c0_3] : memref<1x1xf32, #tpu.memory_space<vmem>>, vector<1x1xf32>
    %8 = arith.mulf %6, %6 : vector<8x256xf32>
    %9 = vector.shape_cast %8 : vector<8x256xf32> to vector<1x8x256xf32>
    %cst = arith.constant dense<0.000000e+00> : vector<1xf32>
    %10 = vector.multi_reduction <add>, %9, %cst [1, 2] : vector<1x8x256xf32> to vector<1xf32>
    %11 = vector.shape_cast %10 : vector<1xf32> to vector<1x1x1xf32>
    %12 = vector.extract %11[0, 0, 0] : f32 from vector<1x1x1xf32>
    %13 = vector.broadcast %12 : f32 to vector<1x1xf32>
    %14 = arith.addf %7, %13 : vector<1x1xf32>
    %c0_4 = arith.constant 0 : index
    %c0_5 = arith.constant 0 : index
    %15 = vector.load %arg2[%c0_4, %c0_5] : memref<1x1xf32, #tpu.memory_space<vmem>>, vector<1x1xf32>
    tpu.vector_store %arg2[%c0_4, %c0_5], %14 {strides = array<i32>} : memref<1x1xf32, #tpu.memory_space<vmem>>, vector<1x1xf32>,
    %c3_i32 = arith.constant 3 : i32
    %16 = arith.cmpi eq, %arg0, %c3_i32 : i32
    %17 = arith.extui %16 : i1 to i32
    %c0_i32_6 = arith.constant 0 : i32
    %18 = arith.cmpi ne, %17, %c0_i32_6 : i32
    scf.if %18 {
      %c0_7 = arith.constant 0 : index
      %c0_8 = arith.constant 0 : index
      %19 = vector.load %arg2[%c0_7, %c0_8] : memref<1x1xf32, #tpu.memory_space<vmem>>, vector<1x1xf32>
      %cst_9 = arith.constant 9.765625E-4 : f32
      %20 = vector.broadcast %cst_9 : f32 to vector<1x1xf32>
      %21 = arith.mulf %19, %20 : vector<1x1xf32>
      %c0_10 = arith.constant 0 : index
      %c0_11 = arith.constant 0 : index
      %22 = vector.load %arg2[%c0_10, %c0_11] : memref<1x1xf32, #tpu.memory_space<vmem>>, vector<1x1xf32>
      tpu.vector_store %arg2[%c0_10, %c0_11], %21 {strides = array<i32>} : memref<1x1xf32, #tpu.memory_space<vmem>>, vector<1x1xf32>,
    } else {
    }
    return
  }
  func.func @transform_0(%arg0: i32) -> (i32, i32) {
    %c0_i32 = arith.constant 0 : i32
    %c0_i32_0 = arith.constant 0 : i32
    return %c0_i32, %arg0 : i32, i32
  }
  func.func @transform_1(%arg0: i32) -> (i32, i32) {
    %c0_i32 = arith.constant 0 : i32
    %c0_i32_0 = arith.constant 0 : i32
    %c0_i32_1 = arith.constant 0 : i32
    return %c0_i32, %c0_i32_0 : i32, i32
  }
}

</mosaic_0001>

<bundles_post_ra>
// kernel: sliced_ws_loss_3d.2
= control target key start
LH: loop header
LB: loop body
LE: loop exit
PB: predicated region body
PF: predicated region fallthrough
CT: control target
= control target key end

     0   :  { %s559_s18 = smov 0   ;;  %s561_s19 = smov 0   ;;  %s621_s0 = inlined_call_operand.vmem [shape: f32[8,1], index: 0, kind: input, shape index: {}]   ;;  %s622_s1 = inlined_call_operand.vmem [shape: f32[8,1], index: 1, kind: input, shape index: {}]   ;;  %s623_s2 = inlined_call_operand.vmem [shape: f32[8,1], index: 2, kind: input, shape index: {}]   ;;  %s624_s3 = inlined_call_operand.vmem [shape: f32[3,1024], index: 3, kind: input, shape index: {}]   ;;  %s625_s4 = inlined_call_operand.vmem [shape: f32[3,1024], index: 4, kind: input, shape index: {}]   ;;  %s626_s5 = inlined_call_operand.vmem [shape: f32[16,1024], index: 5, kind: output, shape index: {}]  }
   0x1   :  { %s563_s20 = smov 0  }
   0x2 LB: > { %s572_s21 = sadd.s32 4294967295, %s526_s20   ;;  %s574_s22 = sadd.s32 1, %s526_s20   ;;  %s526_s20 = sphi %s563_s20, %s630_s20   ;;  %s522_s19 = sphi %s561_s19, %s629_s19   ;;  %s518_s18 = sphi %s559_s18, %s628_s18  }
   0x3   : > { %s134_s23 = ssub.s32 %s526_s20, %s574_s22  ;;  %s137_s24 = sadd.s32 1, %s522_s19 }
   0x4   : > { %p135_p0 = scmp.eq.s32.totalorder %s134_s23, 0  ;;  %p147_p1 = scmp.ne.s32.totalorder %s522_s19, %s518_s18 }
   0x5   : > { %p148_p2 = scmp.eq.s32.totalorder %s572_s21, 3  ;;  %p461_p3 = scmp.ge.s32.totalorder %s526_s20, 1 }
   0x6   : > { %s582_s25 = scalar_select %p135_p0, %s522_s19, %s137_s24  }
   0x7   : > { %p584_p4 = por %p148_p2, %p147_p1  ;;  %p199_p5 = scmp.lt.s32.totalorder %s526_s20, 5 }
   0x9   : > { %p200_p6 = pnand %p461_p3, %p199_p5 }
   0xa   : > { %s463_s8 = sshll.u32 (!%p200_p6), %s572_s21, 1  ;;  %s228_s16 = sand.u32 (!%p200_p6), 1, %s518_s18  }
   0xb   : > { %203 = sbr.rel (%p200_p6) target bundleno = 162 (0xa2), region = 40  ;;  %p232_p7 = scmp.lt.s32.totalorder (!%p200_p6), %s463_s8, 7 }
   0xc   : > { %s462_s17 = sshll.u32 (!%p200_p6), %s228_s16, 5 }
   0xd   : > { %s230_s18 = scalar_lea.vmem (!%p200_p6), [#allocation2], %s462_s17 }
  0x10   : > { %v244_v0 = vld [vmem:[%s621_s0] sm:$0xff]  ;;  %v528_v2 = vmov 0   ;;  %s632_s8 = smov (!%p232_p7, %s463_s8), 7  ;;  %v254_v4 = vlaneseq  ;;  %s476_s20 = sshll.u32 (%p584_p4), %s572_s21, 4 }
  0x11   : > { %v246_v1 = vld [vmem:[%s623_s2] sm:$0xff]  ;;  %502 = vset.pattern.permute.xlu0 %v528_v2  ;;  %503 = vset.pattern.permute.xlu1 %v528_v2  ;;  %s464_s9 = sshll.u32 %s632_s8, 2  ;;  %s371_s27 = scalar_lea.vmem (%p584_p4), %s626_s5, %s476_s20 }
  0x12   : > { %250 = vperm.xlu0 %502, %v244_v0   ;;  %292 = vperm.xlu1 %503, %v246_v1   ;;  %v245_v3 = vld [vmem:[%s622_s1] sm:$0xff]  ;;  %v255_v5 = vshrl.u32 %v254_v4, 7  ;;  %s235_s12 = scalar_lea.vmem %s624_s3, %s464_s9  ;;  %s241_s15 = scalar_lea.vmem %s625_s4, %s464_s9 }
  0x13   : > { %v247_v8 = vld [vmem:[%s235_s12] ss:$4 sm:$0x3]  ;;  %v468_v10 = vld [vmem:[%s235_s12 + $0x2] ss:$4 sm:$0x3] }
  0x14   : > { %v256_v6 = vsub.s32 0, %v255_v5  ;;  %v260_v7 = vsub.s32 1, %v255_v5  ;;  %v310_v9 = vld [vmem:[%s241_s15] ss:$4 sm:$0x3] }
  0x15   : > { %v470_v11 = vld [vmem:[%s241_s15 + $0x2] ss:$4 sm:$0x3]  ;;  %v467_v12 = vld [vmem:[%s235_s12 + $0x1] ss:$4 sm:$0x3] }
  0x16   : > { %270 = vperm.xlu0 %502, %v245_v3   ;;  %v469_v13 = vld [vmem:[%s241_s15 + $0x1] ss:$4 sm:$0x3]  ;;  %v257_v14 = vrot.slane %v247_v8, %v256_v6  ;;  %v261_v15 = vrot.slane %v247_v8, %v260_v7  ;;  %v315_v16 = vrot.slane %v310_v9, %v256_v6  ;;  %v319_v17 = vrot.slane %v310_v9, %v260_v7 }
  0x17   : > { %v299_v19 = vrot.slane %v468_v10, %v256_v6  ;;  %v303_v20 = vrot.slane %v468_v10, %v260_v7  ;;  %v347_v21 = vrot.slane %v470_v11, %v256_v6  ;;  %v351_v22 = vrot.slane %v470_v11, %v260_v7 }
  0x18   : > { %v277_v23 = vrot.slane %v467_v12, %v256_v6  ;;  %v281_v24 = vrot.slane %v467_v12, %v260_v7  ;;  %v330_v25 = vrot.slane %v469_v13, %v256_v6  ;;  %v334_v26 = vrot.slane %v469_v13, %v260_v7 }
  0x8d   : > { %v251_v18 = vpop.permute.xlu0 %250  ;;  %v293_v27 = vpop.permute.xlu1 %292 }
  0x8e   : > { %v264_v28 = vmul.f32 %v257_v14, %v251_v18  ;;  %v265_v29 = vmul.f32 %v261_v15, %v251_v18  ;;  %v322_v30 = vmul.f32 %v315_v16, %v251_v18  ;;  %v323_v31 = vmul.f32 %v319_v17, %v251_v18 }
  0x8f   : > { %v306_v33 = vmul.f32 %v299_v19, %v293_v27  ;;  %v307_v34 = vmul.f32 %v303_v20, %v293_v27  ;;  %v354_v35 = vmul.f32 %v347_v21, %v293_v27  ;;  %v355_v36 = vmul.f32 %v351_v22, %v293_v27 }
  0x91   : > { %v271_v32 = vpop.permute.xlu0 %270 }
  0x92   : > { %v284_v37 = vmul.f32 %v277_v23, %v271_v32  ;;  %v285_v38 = vmul.f32 %v281_v24, %v271_v32  ;;  %v337_v39 = vmul.f32 %v330_v25, %v271_v32  ;;  %v338_v40 = vmul.f32 %v334_v26, %v271_v32 }
  0x94   : > { %v286_v41 = vadd.f32 %v284_v37, %v264_v28  ;;  %v287_v42 = vadd.f32 %v285_v38, %v265_v29  ;;  %v339_v43 = vadd.f32 %v337_v39, %v322_v30  ;;  %v340_v44 = vadd.f32 %v338_v40, %v323_v31 }
  0x95   : > { %368 = sbr.rel (!%p584_p4) target bundleno = 162 (0xa2), region = 44 }
  0x96   : > { %v308_v45 = vadd.f32 %v306_v33, %v286_v41  ;;  %v309_v46 = vadd.f32 %v307_v34, %v287_v42  ;;  %v356_v47 = vadd.f32 %v354_v35, %v339_v43  ;;  %v357_v48 = vadd.f32 %v355_v36, %v340_v44 }
  0x98   : > { %358 = vst [vmem:[%s230_s18] sm:$0xff] %v308_v45  ;;  %359 = vst [vmem:[%s230_s18 + $0x8] sm:$0xff] %v309_v46 }
  0x99   : > { %360 = vst [vmem:[%s230_s18 + $0x10] sm:$0xff] %v356_v47  ;;  %361 = vst [vmem:[%s230_s18 + $0x18] sm:$0xff] %v357_v48 }
  0x9f   : > { %v384_v49 = vld [vmem:[%s230_s18] sm:$0xff]  ;;  %v386_v50 = vld [vmem:[%s230_s18 + $0x8] sm:$0xff] }
  0xa0   : > { %v388_v51 = vld [vmem:[%s230_s18 + $0x10] sm:$0xff]  ;;  %v390_v52 = vld [vmem:[%s230_s18 + $0x18] sm:$0xff]  ;;  %385 = vst [vmem:[%s371_s27] sm:$0xff] %v384_v49  ;;  %387 = vst [vmem:[%s371_s27 + $0x8] sm:$0xff] %v386_v50 }
  0xa1   : > { %389 = vst [vmem:[%s371_s27 + $0x40] sm:$0xff] %v388_v51  ;;  %391 = vst [vmem:[%s371_s27 + $0x48] sm:$0xff] %v390_v52 }
  0xa2 PF: > { %p12_p8 = scmp.ge.s32.totalorder %s574_s22, 6   ;;  %s628_s18 = smov %s522_s19 }
  0xa3   : > { %s629_s19 = smov %s582_s25  ;;  %s630_s20 = smov %s574_s22 }
  0xa4   :  { %14 = sbr.rel (!%p12_p8) target bundleno = 2 (0x2), region = 100 }

// kernel: sliced_ws_loss_3d.3
= control target key start
LH: loop header
LB: loop body
LE: loop exit
PB: predicated region body
PF: predicated region fallthrough
CT: control target
= control target key end

     0   :  { %6 = vsyncpa [#allocation4], 0  ;;  %s331_s6 = smov 0   ;;  %s333_s7 = smov 0   ;;  %s394_s0 = inlined_call_operand.vmem [shape: f32[16,1024], index: 0, kind: input, shape index: {}]   ;;  %s395_s1 = inlined_call_operand.hbm [shape: f32[1,1], index: 1, kind: output, shape index: {}]  }
   0x1   :  { %s335_s8 = smov 0  }
   0x2 LB: > { %s347_s9 = sadd.s32 4294967295, %s317_s8   ;;  %s350_s10 = sadd.s32 1, %s317_s8   ;;  %s317_s8 = sphi %s335_s8, %s398_s8   ;;  %s313_s7 = sphi %s333_s7, %s397_s7   ;;  %s309_s6 = sphi %s331_s6, %s396_s6  }
   0x3   : > { %s16_s11 = ssub.s32 %s317_s8, %s350_s10  ;;  %s19_s12 = sadd.s32 1, %s313_s7 }
   0x4   : > { %p17_p0 = scmp.eq.s32.totalorder %s16_s11, 0  ;;  %p26_p1 = scmp.ne.s32.totalorder %s313_s7, %s309_s6 }
   0x5   : > { %p27_p2 = scmp.eq.s32.totalorder %s317_s8, 0  ;;  %p220_p4 = scmp.ge.s32.totalorder %s317_s8, 4 }
   0x6   : > { %s359_s13 = scalar_select %p17_p0, %s313_s7, %s19_s12  }
   0x7   : > { %p28_p3 = por %p27_p2, %p26_p1  ;;  %73 = sbr.rel (%p220_p4) target bundleno = 18 (0x12), region = 16 }
   0xc   : > { %76 = sbr.rel (!%p28_p3) target bundleno = 18 (0x12), region = 20  ;;  %s78_s14 = sand.u32 (%p28_p3), 1, %s313_s7  }
   0xd   : > { %s232_s15 = sshll.u32 (%p28_p3), %s317_s8, 4  ;;  %s221_s16 = sshll.u32 (%p28_p3), %s78_s14, 5 }
   0xe   : > { %s83_s19 = scalar_lea.vmem (%p28_p3), %s394_s0, %s232_s15  ;;  %s80_s20 = scalar_lea.vmem (%p28_p3), [#allocation2], %s221_s16 }
   0xf   : > { %v96_v0 = vld [vmem:[%s83_s19] sm:$0xff] (%p28_p3)  ;;  %v98_v1 = vld [vmem:[%s83_s19 + $0x8] sm:$0xff] (%p28_p3) }
  0x10   : > { %v100_v2 = vld [vmem:[%s83_s19 + $0x40] sm:$0xff] (%p28_p3)  ;;  %97 = vst [vmem:[%s80_s20] sm:$0xff] (%p28_p3), %v96_v0  ;;  %99 = vst [vmem:[%s80_s20 + $0x8] sm:$0xff] (%p28_p3), %v98_v1  ;;  %v102_v3 = vld [vmem:[%s83_s19 + $0x48] sm:$0xff] (%p28_p3) }
  0x11   : > { %101 = vst [vmem:[%s80_s20 + $0x10] sm:$0xff] %v100_v2  ;;  %103 = vst [vmem:[%s80_s20 + $0x18] sm:$0xff] %v102_v3 }
  0x12 PF: > { %p224_p5 = scmp.ge.s32.totalorder %s317_s8, 1  ;;  %p108_p6 = scmp.lt.s32.totalorder %s317_s8, 5 }
  0x14   : > { %p109_p7 = pnand %p224_p5, %p108_p6 }
  0x15   : > { %s115_s21 = sand.u32 (!%p109_p7), 1, %s309_s6   ;;  %p226_p8 = scmp.ne.s32.totalorder (!%p109_p7), %s347_s9, 0 }
  0x16   : > { %112 = sbr.rel (%p109_p7) target bundleno = 271 (0x10f), region = 43  ;;  %s225_s22 = sshll.u32 (!%p109_p7), %s115_s21, 5 }
  0x17   : > { %s117_s23 = scalar_lea.vmem (!%p109_p7), [#allocation2], %s225_s22 }
  0x1b   : > { %133 = sbr.rel (%p226_p8) target bundleno = 34 (0x22), region = 51 }
  0x20   : > { %vm134_vm0 = vcmask 0   ;;  %v319_v4 = vmov 0.0  }
  0x21   : > { %135 = vst.msk [vmem:[#allocation3] sm:$0x1] %vm134_vm0, %v319_v4 }
  0x22 PF: > { %v136_v5 = vld [vmem:[%s117_s23] sm:$0xff]  ;;  %v137_v6 = vld [vmem:[%s117_s23 + $0x8] sm:$0xff]  ;;  %v138_v7 = vld [vmem:[%s117_s23 + $0x10] sm:$0xff]  ;;  %vm157_vm1 = vcmask 0   ;;  %p227_p9 = scmp.ne.s32.totalorder %s347_s9, 3 }
  0x23   : > { %v139_v8 = vld [vmem:[%s117_s23 + $0x18] sm:$0xff]  ;;  %v140_v9 = vsub.f32 %v136_v5, %v138_v7 }
  0x24   : > { %v141_v10 = vsub.f32 %v137_v6, %v139_v8 }
  0x25   : > { %v143_v11 = vmul.f32 %v140_v9, %v140_v9 }
  0x26   : > { %v144_v12 = vmul.f32 %v141_v10, %v141_v10 }
  0x28   : > { %v145_v13 = vadd.f32 %v144_v12, %v143_v11  ;;  %v142_v21 = vld [vmem:[#allocation3] sm:$0x1] }
  0x2a   : > { %146 = vadd.xlane.f32.xlu0 %v145_v13 }
  0xb3   : > { %v147_v14 = vpop.xlane.xlu0 %146 }
  0xb4   : > { %v148_v15 = vrot.slane %v147_v14, 4 }
  0xb6   : > { %v149_v16 = vadd.f32 %v148_v15, %v147_v14 }
  0xb8   : > { %v150_v17 = vrot.slane %v149_v16, 2 }
  0xba   : > { %v151_v18 = vadd.f32 %v150_v17, %v149_v16 }
  0xbc   : > { %v152_v19 = vrot.slane %v151_v18, 1 }
  0xbe   : > { %v153_v20 = vadd.f32 %v152_v19, %v151_v18 }
  0xc0   : > { %233 = vpush %v153_v20 }
  0xf1   : > { %s234_s24 = spop %233  ;;  %162 = sbr.rel (%p227_p9) target bundleno = 256 (0x100), region = 55 }
  0xf2   : > { %v155_v22 = vstv %s234_s24 }
  0xf3   : > { %v156_v23 = vadd.f32 %v155_v22, %v142_v21 }
  0xf5   : > { %158 = vst.msk [vmem:[#allocation3] sm:$0x1] %vm157_vm1, %v156_v23 }
  0xfc   : > { %v163_v24 = vld [vmem:[#allocation3] sm:$0x1] }
  0xfd   : > { %v164_v25 = vmul.f32 0.0009765625, %v163_v24 }
  0xff   : > { %165 = vst.msk [vmem:[#allocation3] sm:$0x1] %vm157_vm1, %v164_v25 }
 0x100 PF: > { %p239_p10 = scmp.eq.s32.totalorder %s347_s9, 3  ;;  %s320_s25 = smov [#allocation3]  }
 0x101   : > { %s173_s26 = sshll.u32 %s320_s25, 4  ;;  %s174_s26 = int_to_ptr.vmem [resolvable:$true] %s173_s26 }
 0x102   : > { %s267_s27 = scalar_lea.vmem %s174_s26, 16  ;;  %s273_s28 = scalar_lea.vmem %s174_s26, 32 }
 0x103   : > { %p268_p11 = scmp.ne.s32.totalorder %s174_s26, %s267_s27  ;;  %p274_p0 = scmp.lt.s32.totalorder %s174_s26, %s174_s26 }
 0x104   : > { %p275_p1 = scmp.lt.s32.totalorder %s273_s28, %s267_s27 }
 0x105   : > { %p269_p12 = pnand %p268_p11, %p239_p10 }
 0x106   : > { %p276_p2 = por %p275_p1, %p274_p0 }
 0x107   : > { %p270_p13 = pneg %p269_p12 }
 0x109   : > { %p277_p3 = pnand %p276_p2, %p270_p13 }
 0x10b   : > { %280 = shalt.err (!%p277_p3)
}
 0x10c   : > { %236 = dma.vmem_to_hbm [thread:$0]  (%p239_p10), %s174_s26, 16, %s395_s1, [#allocation4]  }
 0x10d   : > { %304 = dma.done.wait (%p239_p10), [#allocation4], 16  }
 0x10e   : > { %306 = vsyncadd (%p239_p10), [#allocation4], 4294967280 }
 0x10f PF: > { %p9_p4 = scmp.ge.s32.totalorder %s350_s10, 6   ;;  %s396_s6 = smov %s313_s7 }
 0x110   : > { %s397_s7 = smov %s359_s13  ;;  %s398_s8 = smov %s350_s10 }
 0x111   :  { %11 = sbr.rel (!%p9_p4) target bundleno = 2 (0x2), region = 87 }
 0x116   :  { %186 = vsyncpa [#allocation4], 1 }
 0x117   :  { %188 = vsyncpa [#allocation4 + $0x1], 1 }

</bundles_post_ra>
